<compile_context>
chip_gen: v7x
topology: tpu7x:2x2x1
jax: 0.10.0
libtpu: 0.0.40
codegen_flags: <defaults>
</compile_context>

<pallas_src>
import jax
import jax.numpy as jnp
from jax.experimental import pallas as pl
from jax.experimental.pallas import tpu as pltpu

_LANES = 128


def _gap_kernel(x_ref, o_ref):
    # x_ref: (tg, 128, L) in VMEM; o_ref: (tg, 128) lane-dense.
    x = x_ref[...].astype(jnp.float32)          # VPU upcast (no-op for f32)
    L = x.shape[-1]
    s = jnp.sum(x, axis=-1)                     # cross-lane reduce -> (tg, 128)
    o_ref[...] = (s * (1.0 / L)).astype(o_ref.dtype)


def _choose_group_tile(num_groups, padded_group_bytes, target_bytes):
    """Pick how many 128-row groups per block: either the full group count or a
    multiple of 8 (keeps the output block's second-to-last dim legal), sized so
    one input block is ~target_bytes of *padded* VMEM."""
    tg = max(1, target_bytes // max(1, padded_group_bytes))
    tg = min(tg, num_groups)
    if tg < num_groups:
        tg = max(8, (tg // 8) * 8)
        tg = min(tg, num_groups)
        if tg < num_groups and tg % 8 != 0:
            tg = num_groups  # fallback: single block (only when num_groups < 8)
    return tg


def global_average_pooling(x, *, target_block_bytes=2 * 1024 * 1024):
    """x: (N, C, L) -> (N, C), mean over the last (length) axis."""
    N, C, L = x.shape
    R = N * C
    itemsize = jnp.dtype(x.dtype).itemsize

    # Group rows into 128-wide lane groups; pad the row count up front so the
    # kernel never sees a ragged lane dimension.
    G = pl.cdiv(R, _LANES)
    R_pad = G * _LANES
    xf = x.reshape(R, L)
    if R_pad != R:
        xf = jnp.pad(xf, ((0, R_pad - R), (0, 0)))
    xg = xf.reshape(G, _LANES, L)

    # VMEM footprint per 128-row group, accounting for lane padding of L.
    L_pad = -(-L // _LANES) * _LANES
    group_bytes = _LANES * L_pad * itemsize
    tg = _choose_group_tile(G, group_bytes, target_block_bytes)
    grid = pl.cdiv(G, tg)

    cost = pl.CostEstimate(
        flops=R_pad * L,
        transcendentals=0,
        bytes_accessed=R_pad * L * itemsize + R_pad * itemsize,
    )

    out = pl.pallas_call(
        _gap_kernel,
        out_shape=jax.ShapeDtypeStruct((G, _LANES), x.dtype),
        grid=(grid,),
        in_specs=[pl.BlockSpec((tg, _LANES, L), lambda i: (i, 0, 0))],
        out_specs=pl.BlockSpec((tg, _LANES), lambda i: (i, 0)),
        compiler_params=pltpu.CompilerParams(
            dimension_semantics=("parallel",),
        ),
        cost_estimate=cost,
    )(xg)

    return out.reshape(R_pad)[:R].reshape(N, C)


if __name__ == "__main__":
    # Small analogue of the module's (64, 1500, 86) convention.
    # N*C = 500 is not a multiple of 128, exercising the row-padding path.
    N, C, L = 2, 250, 86
    key = jax.random.PRNGKey(0)
    x = jax.random.normal(key, (N, C, L), dtype=jnp.float32)

    out = jax.block_until_ready(global_average_pooling(x))

    # Sanity check against plain-JAX reference (mean over last axis).
    ref = jnp.mean(x, axis=-1)
    assert out.shape == (N, C)
    assert jnp.allclose(out, ref, atol=1e-5, rtol=1e-5), float(
        jnp.max(jnp.abs(out - ref))
    )

    print("KERNEL_OK")
</pallas_src>

<mosaic_0001>
module attributes {stable_mosaic.version = 11 : i64} {
  func.func @_gap_kernel(%arg0: i32, %arg1: memref<4x128x86xf32, #tpu.memory_space<vmem>>, %arg2: memref<4x128xf32, #tpu.memory_space<vmem>>) attributes {dimension_semantics = [#tpu.dimension_semantics<parallel>], iteration_bounds = array<i64: 1>, scalar_prefetch = 0 : i64, scratch_operands = 0 : i64, tpu.core_type = #tpu.core_type<tc>, window_params = [{transform_indices = @transform_0, window_bounds = array<i64: 4, 128, 86>}, {transform_indices = @transform_1, window_bounds = array<i64: 4, 128>}]} {
    %c0 = arith.constant 0 : index
    %c0_0 = arith.constant 0 : index
    %c0_1 = arith.constant 0 : index
    %0 = vector.load %arg1[%c0, %c0_0, %c0_1] : memref<4x128x86xf32, #tpu.memory_space<vmem>>, vector<4x128x86xf32>
    %cst = arith.constant dense<0.000000e+00> : vector<4x128xf32>
    %1 = vector.multi_reduction <add>, %0, %cst [2] : vector<4x128x86xf32> to vector<4x128xf32>
    %cst_2 = arith.constant 0.0116279069 : f32
    %2 = vector.broadcast %cst_2 : f32 to vector<4x128xf32>
    %3 = arith.mulf %1, %2 : vector<4x128xf32>
    %c0_3 = arith.constant 0 : index
    %c0_4 = arith.constant 0 : index
    %4 = vector.load %arg2[%c0_3, %c0_4] : memref<4x128xf32, #tpu.memory_space<vmem>>, vector<4x128xf32>
    tpu.vector_store %arg2[%c0_3, %c0_4], %3 {strides = array<i32>} : memref<4x128xf32, #tpu.memory_space<vmem>>, vector<4x128xf32>,
    return
  }
  func.func @transform_0(%arg0: i32) -> (i32, i32, i32) {
    %c0_i32 = arith.constant 0 : i32
    %c0_i32_0 = arith.constant 0 : i32
    %c0_i32_1 = arith.constant 0 : i32
    return %arg0, %c0_i32, %c0_i32_0 : i32, i32, i32
  }
  func.func @transform_1(%arg0: i32) -> (i32, i32) {
    %c0_i32 = arith.constant 0 : i32
    %c0_i32_0 = arith.constant 0 : i32
    return %arg0, %c0_i32 : i32, i32
  }
}

</mosaic_0001>

<bundles_post_ra>
// kernel: tpu_custom_call.1
= control target key start
LH: loop header
LB: loop body
LE: loop exit
PB: predicated region body
PF: predicated region fallthrough
CT: control target
= control target key end

     0   :  { %vm73_vm0 = vcmask 703488   ;;  %s1280_s0 = inlined_call_operand.vmem [shape: f32[4,128,86], index: 0, kind: input, shape index: {}]   ;;  %s1281_s1 = inlined_call_operand.hbm [shape: f32[4,128], index: 1, kind: output, shape index: {}]  }
   0x1   :  { %v11_v0 = vld [vmem:[%s1280_s0 + $0x10] sm:$0xff]  ;;  %v9_v1 = vld [vmem:[%s1280_s0] sm:$0xff]  ;;  %v12_v2 = vld [vmem:[%s1280_s0 + $0x18] sm:$0xff] }
   0x2   :  { %v80_v3 = vsel %vm73_vm0, %v11_v0, 0.0  ;;  %v74_v4 = vsel %vm73_vm0, %v9_v1, 0.0  ;;  %v10_v5 = vld [vmem:[%s1280_s0 + $0x8] sm:$0xff]  ;;  %v83_v6 = vsel %vm73_vm0, %v12_v2, 0.0  ;;  %v13_v9 = vld [vmem:[%s1280_s0 + $0x20] sm:$0xff]  ;;  %v16_v12 = vld [vmem:[%s1280_s0 + $0x38] sm:$0xff] }
   0x3   :  { %81 = vadd.xlane.f32.xlu1 %v80_v3  ;;  %75 = vadd.xlane.f32.xlu0 %v74_v4  ;;  %v77_v7 = vsel %vm73_vm0, %v10_v5, 0.0  ;;  %v14_v8 = vld [vmem:[%s1280_s0 + $0x28] sm:$0xff]  ;;  %v86_v11 = vsel %vm73_vm0, %v13_v9, 0.0  ;;  %v15_v13 = vld [vmem:[%s1280_s0 + $0x30] sm:$0xff]  ;;  %v95_v14 = vsel %vm73_vm0, %v16_v12, 0.0  ;;  %v17_v17 = vld [vmem:[%s1280_s0 + $0x40] sm:$0xff] }
   0x4   :  { %v89_v10 = vsel %vm73_vm0, %v14_v8, 0.0  ;;  %v92_v15 = vsel %vm73_vm0, %v15_v13, 0.0  ;;  %v18_v16 = vld [vmem:[%s1280_s0 + $0x48] sm:$0xff]  ;;  %v98_v19 = vsel %vm73_vm0, %v17_v17, 0.0  ;;  %v20_v20 = vld [vmem:[%s1280_s0 + $0x58] sm:$0xff]  ;;  %v19_v21 = vld [vmem:[%s1280_s0 + $0x50] sm:$0xff] }
   0x5   :  { %v101_v18 = vsel %vm73_vm0, %v18_v16, 0.0  ;;  %v107_v22 = vsel %vm73_vm0, %v20_v20, 0.0  ;;  %v104_v23 = vsel %vm73_vm0, %v19_v21, 0.0  ;;  %v22_v24 = vld [vmem:[%s1280_s0 + $0x68] sm:$0xff]  ;;  %v21_v25 = vld [vmem:[%s1280_s0 + $0x60] sm:$0xff] }
   0x7   :  { %84 = vadd.xlane.f32.xlu1 %v83_v6  ;;  %78 = vadd.xlane.f32.xlu0 %v77_v7 }
   0xb   :  { %90 = vadd.xlane.f32.xlu1 %v89_v10  ;;  %87 = vadd.xlane.f32.xlu0 %v86_v11 }
   0xf   :  { %96 = vadd.xlane.f32.xlu1 %v95_v14  ;;  %93 = vadd.xlane.f32.xlu0 %v92_v15 }
  0x13   :  { %102 = vadd.xlane.f32.xlu1 %v101_v18  ;;  %99 = vadd.xlane.f32.xlu0 %v98_v19 }
  0x17   :  { %108 = vadd.xlane.f32.xlu1 %v107_v22  ;;  %105 = vadd.xlane.f32.xlu0 %v104_v23 }
  0x18   :  { %6 = vsyncpa [#allocation3], 0  ;;  %v113_v26 = vsel %vm73_vm0, %v22_v24, 0.0  ;;  %v110_v27 = vsel %vm73_vm0, %v21_v25, 0.0  ;;  %v24_v28 = vld [vmem:[%s1280_s0 + $0x78] sm:$0xff]  ;;  %v23_v29 = vld [vmem:[%s1280_s0 + $0x70] sm:$0xff] }
  0x19   :  { %v119_v30 = vsel %vm73_vm0, %v24_v28, 0.0  ;;  %v116_v31 = vsel %vm73_vm0, %v23_v29, 0.0  ;;  %v26_v32 = vld [vmem:[%s1280_s0 + $0x88] sm:$0xff]  ;;  %v25_v33 = vld [vmem:[%s1280_s0 + $0x80] sm:$0xff]  ;;  %v27_v37 = vld [vmem:[%s1280_s0 + $0x90] sm:$0xff]  ;;  %vm405_vm1 = vcmask 130112  }
  0x1a   :  { %v125_v34 = vsel %vm73_vm0, %v26_v32, 0.0  ;;  %v122_v35 = vsel %vm73_vm0, %v25_v33, 0.0  ;;  %v41_v36 = vld [vmem:[%s1280_s0 + $0x100] sm:$0xff]  ;;  %v128_v39 = vsel %vm73_vm0, %v27_v37, 0.0  ;;  %v28_v40 = vld [vmem:[%s1280_s0 + $0x98] sm:$0xff]  ;;  %v42_v41 = vld [vmem:[%s1280_s0 + $0x108] sm:$0xff] }
  0x1b   :  { %114 = vadd.xlane.f32.xlu1 %v113_v26  ;;  %111 = vadd.xlane.f32.xlu0 %v110_v27  ;;  %v170_v38 = vsel %vm73_vm0, %v41_v36, 0.0  ;;  %v131_v42 = vsel %vm73_vm0, %v28_v40, 0.0  ;;  %v173_v43 = vsel %vm73_vm0, %v42_v41, 0.0  ;;  %v57_v44 = vld [vmem:[%s1280_s0 + $0x180] sm:$0xff]  ;;  %v43_v45 = vld [vmem:[%s1280_s0 + $0x110] sm:$0xff]  ;;  %v58_v49 = vld [vmem:[%s1280_s0 + $0x188] sm:$0xff] }
  0x1c   :  { %v218_v46 = vsel %vm73_vm0, %v57_v44, 0.0  ;;  %v176_v47 = vsel %vm73_vm0, %v43_v45, 0.0  ;;  %v29_v48 = vld [vmem:[%s1280_s0 + $0xa0] sm:$0xff]  ;;  %v221_v51 = vsel %vm73_vm0, %v58_v49, 0.0  ;;  %v59_v52 = vld [vmem:[%s1280_s0 + $0x190] sm:$0xff]  ;;  %v44_v53 = vld [vmem:[%s1280_s0 + $0x118] sm:$0xff] }
  0x1d   :  { %v134_v50 = vsel %vm73_vm0, %v29_v48, 0.0  ;;  %v224_v54 = vsel %vm73_vm0, %v59_v52, 0.0  ;;  %v179_v55 = vsel %vm73_vm0, %v44_v53, 0.0  ;;  %v45_v56 = vld [vmem:[%s1280_s0 + $0x120] sm:$0xff]  ;;  %v30_v57 = vld [vmem:[%s1280_s0 + $0xa8] sm:$0xff]  ;;  %v31_v60 = vld [vmem:[%s1280_s0 + $0xb0] sm:$0xff] }
  0x1e   :  { %v182_v58 = vsel %vm73_vm0, %v45_v56, 0.0  ;;  %v137_v59 = vsel %vm73_vm0, %v30_v57, 0.0  ;;  %v60_v61 = vld [vmem:[%s1280_s0 + $0x198] sm:$0xff]  ;;  %v140_v62 = vsel %vm73_vm0, %v31_v60, 0.0  ;;  %v61_v0 = vld [vmem:[%s1280_s0 + $0x1a0] sm:$0xff]  ;;  %v46_v1 = vld [vmem:[%s1280_s0 + $0x128] sm:$0xff] }
  0x1f   :  { %120 = vadd.xlane.f32.xlu1 %v119_v30  ;;  %117 = vadd.xlane.f32.xlu0 %v116_v31  ;;  %v227_v63 = vsel %vm73_vm0, %v60_v61, 0.0  ;;  %v230_v2 = vsel %vm73_vm0, %v61_v0, 0.0  ;;  %v185_v3 = vsel %vm73_vm0, %v46_v1, 0.0  ;;  %v47_v4 = vld [vmem:[%s1280_s0 + $0x130] sm:$0xff]  ;;  %v32_v5 = vld [vmem:[%s1280_s0 + $0xb8] sm:$0xff]  ;;  %v33_v8 = vld [vmem:[%s1280_s0 + $0xc0] sm:$0xff]  ;;  %v394_v0 = vlaneseq }
  0x20   :  { %v188_v6 = vsel %vm73_vm0, %v47_v4, 0.0  ;;  %v143_v7 = vsel %vm73_vm0, %v32_v5, 0.0  ;;  %v62_v9 = vld [vmem:[%s1280_s0 + $0x1a8] sm:$0xff]  ;;  %v146_v10 = vsel %vm73_vm0, %v33_v8, 0.0  ;;  %v63_v12 = vld [vmem:[%s1280_s0 + $0x1b0] sm:$0xff]  ;;  %v48_v13 = vld [vmem:[%s1280_s0 + $0x138] sm:$0xff] }
  0x21   :  { %v233_v11 = vsel %vm73_vm0, %v62_v9, 0.0  ;;  %v236_v14 = vsel %vm73_vm0, %v63_v12, 0.0  ;;  %v191_v15 = vsel %vm73_vm0, %v48_v13, 0.0  ;;  %v49_v16 = vld [vmem:[%s1280_s0 + $0x140] sm:$0xff]  ;;  %v34_v17 = vld [vmem:[%s1280_s0 + $0xc8] sm:$0xff]  ;;  %v35_v20 = vld [vmem:[%s1280_s0 + $0xd0] sm:$0xff] }
  0x22   :  { %v194_v18 = vsel %vm73_vm0, %v49_v16, 0.0  ;;  %v149_v19 = vsel %vm73_vm0, %v34_v17, 0.0  ;;  %v64_v21 = vld [vmem:[%s1280_s0 + $0x1b8] sm:$0xff]  ;;  %v152_v22 = vsel %vm73_vm0, %v35_v20, 0.0  ;;  %v65_v24 = vld [vmem:[%s1280_s0 + $0x1c0] sm:$0xff]  ;;  %v50_v25 = vld [vmem:[%s1280_s0 + $0x148] sm:$0xff] }
  0x23   :  { %126 = vadd.xlane.f32.xlu1 %v125_v34  ;;  %123 = vadd.xlane.f32.xlu0 %v122_v35  ;;  %v239_v23 = vsel %vm73_vm0, %v64_v21, 0.0  ;;  %v242_v26 = vsel %vm73_vm0, %v65_v24, 0.0  ;;  %v197_v27 = vsel %vm73_vm0, %v50_v25, 0.0  ;;  %v51_v28 = vld [vmem:[%s1280_s0 + $0x150] sm:$0xff]  ;;  %v36_v29 = vld [vmem:[%s1280_s0 + $0xd8] sm:$0xff]  ;;  %v37_v32 = vld [vmem:[%s1280_s0 + $0xe0] sm:$0xff] }
  0x24   :  { %v200_v30 = vsel %vm73_vm0, %v51_v28, 0.0  ;;  %v155_v31 = vsel %vm73_vm0, %v36_v29, 0.0  ;;  %v66_v33 = vld [vmem:[%s1280_s0 + $0x1c8] sm:$0xff]  ;;  %v158_v34 = vsel %vm73_vm0, %v37_v32, 0.0  ;;  %v67_v36 = vld [vmem:[%s1280_s0 + $0x1d0] sm:$0xff]  ;;  %v52_v37 = vld [vmem:[%s1280_s0 + $0x158] sm:$0xff] }
  0x25   :  { %v245_v35 = vsel %vm73_vm0, %v66_v33, 0.0  ;;  %v53_v40 = vld [vmem:[%s1280_s0 + $0x160] sm:$0xff]  ;;  %v38_v41 = vld [vmem:[%s1280_s0 + $0xe8] sm:$0xff]  ;;  %v39_v44 = vld [vmem:[%s1280_s0 + $0xf0] sm:$0xff]  ;;  %v1056_v1 = vand.u32 127, %v394_v0  ;;  %vm412_vm2 = vcmask 195712  }
  0x26   :  { %v68_v45 = vld [vmem:[%s1280_s0 + $0x1d8] sm:$0xff]  ;;  %v69_v48 = vld [vmem:[%s1280_s0 + $0x1e0] sm:$0xff]  ;;  %v54_v49 = vld [vmem:[%s1280_s0 + $0x168] sm:$0xff]  ;;  %vm419_vm3 = vcmask 261312   ;;  %vm426_vm4 = vcmask 326912   ;;  %vm433_vm5 = vcmask 392512  }
  0x27   :  { %171 = vadd.xlane.f32.xlu1 %v170_v38  ;;  %129 = vadd.xlane.f32.xlu0 %v128_v39  ;;  %v248_v38 = vsel %vm73_vm0, %v67_v36, 0.0  ;;  %v203_v39 = vsel %vm73_vm0, %v52_v37, 0.0  ;;  %v55_v52 = vld [vmem:[%s1280_s0 + $0x170] sm:$0xff]  ;;  %v40_v53 = vld [vmem:[%s1280_s0 + $0xf8] sm:$0xff]  ;;  %v70_v57 = vld [vmem:[%s1280_s0 + $0x1e8] sm:$0xff]  ;;  %v400_v4 = vadd.s32 4294967288, %v1056_v1 }
  0x28   :  { %v56_v56 = vld [vmem:[%s1280_s0 + $0x178] sm:$0xff]  ;;  %v71_v60 = vld [vmem:[%s1280_s0 + $0x1f0] sm:$0xff]  ;;  %v407_v5 = vadd.s32 4294967280, %v1056_v1  ;;  %v428_v8 = vadd.s32 4294967256, %v1056_v1  ;;  %v421_v9 = vadd.s32 4294967264, %v1056_v1  ;;  %v449_v36 = vadd.s32 4294967232, %v1056_v1 }
  0x29   :  { %v72_v61 = vld [vmem:[%s1280_s0 + $0x1f8] sm:$0xff]  ;;  %vm440_vm6 = vcmask 458112   ;;  %vm447_vm7 = vcmask 523712   ;;  %vm454_vm8 = vcmask 589312   ;;  %vm461_vm9 = vcmask 654912   ;;  %s789_s0 = smov [#allocation2]  }
  0x2a   :  { %vm468_vm10 = vcmask 720512   ;;  %vm475_vm11 = vcmask 786112   ;;  %vm482_vm12 = vcmask 851712   ;;  %vm489_vm13 = vcmask 917312   ;;  %s756_s18 = sshll.u32 %s789_s0, 4  ;;  %s757_s18 = int_to_ptr.vmem [resolvable:$true] %s756_s18 }
  0x2b   :  { %132 = vadd.xlane.f32.xlu1 %v131_v42  ;;  %174 = vadd.xlane.f32.xlu0 %v173_v43  ;;  %v206_v42 = vsel %vm73_vm0, %v53_v40, 0.0  ;;  %v161_v43 = vsel %vm73_vm0, %v38_v41, 0.0  ;;  %vm496_vm14 = vcmask 982912   ;;  %vm503_vm15 = vcmask 1048512   ;;  %s765_s19 = scalar_lea.vmem %s757_s18, 64  ;;  %p770_p1 = scmp.lt.s32.totalorder %s757_s18, %s757_s18 }
  0x2c   :  { %p766_p0 = scmp.ne.s32.totalorder %s757_s18, %s765_s19  ;;  %p771_p2 = scmp.lt.s32.totalorder %s765_s19, %s765_s19 }
  0x2e   :  { %p772_p3 = por %p771_p2, %p770_p1 }
  0x2f   :  { %219 = vadd.xlane.f32.xlu1 %v218_v46  ;;  %177 = vadd.xlane.f32.xlu0 %v176_v47  ;;  %v164_v46 = vsel %vm73_vm0, %v39_v44, 0.0  ;;  %v251_v47 = vsel %vm73_vm0, %v68_v45, 0.0 }
  0x30   :  { %p773_p4 = pnand %p772_p3, %p766_p0 }
  0x33   :  { %135 = vadd.xlane.f32.xlu1 %v134_v50  ;;  %222 = vadd.xlane.f32.xlu0 %v221_v51  ;;  %v254_v50 = vsel %vm73_vm0, %v69_v48, 0.0  ;;  %v209_v51 = vsel %vm73_vm0, %v54_v49, 0.0 }
  0x37   :  { %225 = vadd.xlane.f32.xlu1 %v224_v54  ;;  %180 = vadd.xlane.f32.xlu0 %v179_v55  ;;  %v212_v54 = vsel %vm73_vm0, %v55_v52, 0.0  ;;  %v167_v55 = vsel %vm73_vm0, %v40_v53, 0.0  ;;  %v463_v52 = vadd.s32 4294967216, %v1056_v1 }
  0x3b   :  { %183 = vadd.xlane.f32.xlu1 %v182_v58  ;;  %138 = vadd.xlane.f32.xlu0 %v137_v59  ;;  %v215_v58 = vsel %vm73_vm0, %v56_v56, 0.0  ;;  %v257_v59 = vsel %vm73_vm0, %v70_v57, 0.0 }
  0x3f   :  { %141 = vadd.xlane.f32.xlu1 %v140_v62  ;;  %228 = vadd.xlane.f32.xlu0 %v227_v63  ;;  %v260_v62 = vsel %vm73_vm0, %v71_v60, 0.0  ;;  %v263_v63 = vsel %vm73_vm0, %v72_v61, 0.0  ;;  %v477_v60 = vadd.s32 4294967200, %v1056_v1  ;;  %vm742_vm0 = vcmask 1041409  }
  0x43   :  { %231 = vadd.xlane.f32.xlu1 %v230_v2  ;;  %186 = vadd.xlane.f32.xlu0 %v185_v3  ;;  %v1058_v2 = vshrl.u32 %v394_v0, 7  ;;  %v414_v3 = vadd.s32 4294967272, %v1056_v1 }
  0x45   :  { %v1070_v12 = vsub.s32 %v414_v3, %v1058_v2  ;;  %v1073_v13 = vsub.s32 %v400_v4, %v1058_v2  ;;  %v1079_v20 = vsub.s32 %v428_v8, %v1058_v2  ;;  %v1082_v21 = vsub.s32 %v421_v9, %v1058_v2 }
  0x46   :  { %v1109_v48 = vsub.s32 %v449_v36, %v1058_v2  ;;  %v1125_v0 = vsub.s32 %v463_v52, %v1058_v2 }
  0x47   :  { %189 = vadd.xlane.f32.xlu1 %v188_v6  ;;  %144 = vadd.xlane.f32.xlu0 %v143_v7 }
  0x4b   :  { %147 = vadd.xlane.f32.xlu1 %v146_v10  ;;  %234 = vadd.xlane.f32.xlu0 %v233_v11  ;;  %v1067_v10 = vsub.s32 %v1056_v1, %v1058_v2 }
  0x4f   :  { %237 = vadd.xlane.f32.xlu1 %v236_v14  ;;  %192 = vadd.xlane.f32.xlu0 %v191_v15  ;;  %v1076_v14 = vsub.s32 %v407_v5, %v1058_v2 }
  0x53   :  { %195 = vadd.xlane.f32.xlu1 %v194_v18  ;;  %150 = vadd.xlane.f32.xlu0 %v149_v19 }
  0x57   :  { %153 = vadd.xlane.f32.xlu1 %v152_v22  ;;  %240 = vadd.xlane.f32.xlu0 %v239_v23  ;;  %v435_v22 = vadd.s32 4294967248, %v1056_v1 }
  0x5b   :  { %243 = vadd.xlane.f32.xlu1 %v242_v26  ;;  %198 = vadd.xlane.f32.xlu0 %v197_v27  ;;  %v442_v26 = vadd.s32 4294967240, %v1056_v1 }
  0x5d   :  { %v1101_v40 = vsub.s32 %v442_v26, %v1058_v2 }
  0x5f   :  { %201 = vadd.xlane.f32.xlu1 %v200_v30  ;;  %156 = vadd.xlane.f32.xlu0 %v155_v31 }
  0x63   :  { %159 = vadd.xlane.f32.xlu1 %v158_v34  ;;  %246 = vadd.xlane.f32.xlu0 %v245_v35  ;;  %v1093_v34 = vsub.s32 %v435_v22, %v1058_v2  ;;  %v456_v35 = vadd.s32 4294967224, %v1056_v1 }
  0x67   :  { %249 = vadd.xlane.f32.xlu1 %v248_v38  ;;  %204 = vadd.xlane.f32.xlu0 %v203_v39 }
  0x6b   :  { %207 = vadd.xlane.f32.xlu1 %v206_v42  ;;  %162 = vadd.xlane.f32.xlu0 %v161_v43 }
  0x6f   :  { %165 = vadd.xlane.f32.xlu1 %v164_v46  ;;  %252 = vadd.xlane.f32.xlu0 %v251_v47  ;;  %v1106_v47 = vsub.s32 %v456_v35, %v1058_v2 }
  0x73   :  { %255 = vadd.xlane.f32.xlu1 %v254_v50  ;;  %210 = vadd.xlane.f32.xlu0 %v209_v51  ;;  %v470_v51 = vadd.s32 4294967208, %v1056_v1 }
  0x77   :  { %213 = vadd.xlane.f32.xlu1 %v212_v54  ;;  %168 = vadd.xlane.f32.xlu0 %v167_v55 }
  0x7b   :  { %216 = vadd.xlane.f32.xlu1 %v215_v58  ;;  %258 = vadd.xlane.f32.xlu0 %v257_v59  ;;  %v484_v59 = vadd.s32 4294967192, %v1056_v1 }
  0x7d   :  { %v1130_v9 = vsub.s32 %v484_v59, %v1058_v2 }
  0x7f   :  { %261 = vadd.xlane.f32.xlu0 %v260_v62  ;;  %264 = vadd.xlane.f32.xlu1 %v263_v63  ;;  %v1122_v63 = vsub.s32 %v470_v51, %v1058_v2 }
  0x90   :  { %v82_v6 = vpop.xlane.xlu1 %81  ;;  %v76_v7 = vpop.xlane.xlu0 %75 }
  0x91   :  { %v266_v11 = vmul.f32 0.011627907, %v76_v7  ;;  %v268_v15 = vmul.f32 0.011627907, %v82_v6 }
  0x93   :  { %v399_v23 = vrot.slane %v266_v11, %v1067_v10  ;;  %v411_v27 = vrot.slane %v268_v15, %v1076_v14  ;;  %v1133_v11 = vsub.s32 %v477_v60, %v1058_v2 }
  0x94   :  { %v85_v16 = vpop.xlane.xlu1 %84  ;;  %v79_v17 = vpop.xlane.xlu0 %78 }
  0x95   :  { %v269_v18 = vmul.f32 0.011627907, %v85_v16  ;;  %v267_v19 = vmul.f32 0.011627907, %v79_v17  ;;  %v498_v17 = vadd.s32 4294967176, %v1056_v1 }
  0x97   :  { %v418_v24 = vrot.slane %v269_v18, %v1070_v12  ;;  %v404_v25 = vrot.slane %v267_v19, %v1073_v13  ;;  %v491_v18 = vadd.s32 4294967184, %v1056_v1 }
  0x98   :  { %v91_v28 = vpop.xlane.xlu1 %90  ;;  %v88_v29 = vpop.xlane.xlu0 %87 }
  0x99   :  { %v406_v30 = vsel %vm405_vm1, %v404_v25, %v399_v23  ;;  %v271_v31 = vmul.f32 0.011627907, %v91_v28  ;;  %v270_v32 = vmul.f32 0.011627907, %v88_v29  ;;  %v1144_v29 = vsub.s32 %v498_v17, %v1058_v2 }
  0x9a   :  { %v413_v33 = vsel %vm412_vm2, %v411_v27, %v406_v30  ;;  %v1147_v30 = vsub.s32 %v491_v18, %v1058_v2 }
  0x9b   :  { %v432_v37 = vrot.slane %v271_v31, %v1079_v20  ;;  %v420_v38 = vsel %vm419_vm3, %v418_v24, %v413_v33  ;;  %v425_v39 = vrot.slane %v270_v32, %v1082_v21 }
  0x9c   :  { %v97_v41 = vpop.xlane.xlu1 %96  ;;  %v94_v42 = vpop.xlane.xlu0 %93 }
  0x9d   :  { %v427_v43 = vsel %vm426_vm4, %v425_v39, %v420_v38  ;;  %v273_v44 = vmul.f32 0.011627907, %v97_v41  ;;  %v272_v45 = vmul.f32 0.011627907, %v94_v42 }
  0x9e   :  { %v434_v46 = vsel %vm433_vm5, %v432_v37, %v427_v43 }
  0x9f   :  { %v446_v49 = vrot.slane %v273_v44, %v1101_v40  ;;  %v439_v50 = vrot.slane %v272_v45, %v1093_v34 }
  0xa0   :  { %v103_v53 = vpop.xlane.xlu1 %102  ;;  %v100_v54 = vpop.xlane.xlu0 %99 }
  0xa1   :  { %v441_v55 = vsel %vm440_vm6, %v439_v50, %v434_v46  ;;  %v275_v56 = vmul.f32 0.011627907, %v103_v53  ;;  %v274_v57 = vmul.f32 0.011627907, %v100_v54 }
  0xa2   :  { %v448_v58 = vsel %vm447_vm7, %v446_v49, %v441_v55 }
  0xa3   :  { %v460_v61 = vrot.slane %v275_v56, %v1106_v47  ;;  %v453_v62 = vrot.slane %v274_v57, %v1109_v48 }
  0xa4   :  { %v109_v3 = vpop.xlane.xlu1 %108  ;;  %v106_v4 = vpop.xlane.xlu0 %105 }
  0xa5   :  { %v455_v5 = vsel %vm454_vm8, %v453_v62, %v448_v58  ;;  %v277_v6 = vmul.f32 0.011627907, %v109_v3  ;;  %v276_v7 = vmul.f32 0.011627907, %v106_v4 }
  0xa6   :  { %v462_v8 = vsel %vm461_vm9, %v460_v61, %v455_v5 }
  0xa7   :  { %v474_v15 = vrot.slane %v277_v6, %v1122_v63  ;;  %v467_v16 = vrot.slane %v276_v7, %v1125_v0 }
  0xa8   :  { %v115_v19 = vpop.xlane.xlu1 %114  ;;  %v112_v22 = vpop.xlane.xlu0 %111 }
  0xa9   :  { %v469_v23 = vsel %vm468_vm10, %v467_v16, %v462_v8  ;;  %v279_v24 = vmul.f32 0.011627907, %v115_v19  ;;  %v278_v25 = vmul.f32 0.011627907, %v112_v22 }
  0xaa   :  { %v476_v26 = vsel %vm475_vm11, %v474_v15, %v469_v23 }
  0xab   :  { %v488_v27 = vrot.slane %v279_v24, %v1130_v9  ;;  %v481_v28 = vrot.slane %v278_v25, %v1133_v11 }
  0xac   :  { %v121_v1 = vpop.xlane.xlu1 %120  ;;  %v118_v31 = vpop.xlane.xlu0 %117 }
  0xad   :  { %v483_v32 = vsel %vm482_vm12, %v481_v28, %v476_v26  ;;  %v281_v33 = vmul.f32 0.011627907, %v121_v1  ;;  %v280_v35 = vmul.f32 0.011627907, %v118_v31 }
  0xae   :  { %v490_v36 = vsel %vm489_vm13, %v488_v27, %v483_v32 }
  0xaf   :  { %v502_v37 = vrot.slane %v281_v33, %v1144_v29  ;;  %v495_v38 = vrot.slane %v280_v35, %v1147_v30 }
  0xb0   :  { %v127_v39 = vpop.xlane.xlu1 %126  ;;  %v124_v41 = vpop.xlane.xlu0 %123 }
  0xb1   :  { %v497_v42 = vsel %vm496_vm14, %v495_v38, %v490_v36  ;;  %v283_v2 = vmul.f32 0.011627907, %v127_v39  ;;  %v282_v43 = vmul.f32 0.011627907, %v124_v41 }
  0xb2   :  { %v1155_v44 = vsel %vm503_vm15, %v502_v37, %v497_v42 }
  0xb3   :  { %v512_v45 = vrot.slane %v283_v2, %v1073_v13  ;;  %v508_v46 = vrot.slane %v282_v43, %v1067_v10 }
  0xb4   :  { %v172_v49 = vpop.xlane.xlu1 %171  ;;  %v130_v50 = vpop.xlane.xlu0 %129 }
  0xb5   :  { %v513_v51 = vsel %vm405_vm1, %v512_v45, %v508_v46  ;;  %v284_v52 = vmul.f32 0.011627907, %v130_v50  ;;  %v298_v53 = vmul.f32 0.011627907, %v172_v49 }
  0xb7   :  { %v517_v54 = vrot.slane %v284_v52, %v1076_v14  ;;  %v587_v60 = vrot.slane %v298_v53, %v1067_v10 }
  0xb8   :  { %v133_v55 = vpop.xlane.xlu1 %132  ;;  %v175_v56 = vpop.xlane.xlu0 %174 }
  0xb9   :  { %v518_v57 = vsel %vm412_vm2, %v517_v54, %v513_v51  ;;  %v285_v58 = vmul.f32 0.011627907, %v133_v55  ;;  %v299_v59 = vmul.f32 0.011627907, %v175_v56 }
  0xbb   :  { %v522_v61 = vrot.slane %v285_v58, %v1070_v12  ;;  %v591_v62 = vrot.slane %v299_v59, %v1073_v13 }
  0xbc   :  { %v220_v3 = vpop.xlane.xlu1 %219  ;;  %v178_v4 = vpop.xlane.xlu0 %177 }
  0xbd   :  { %v523_v5 = vsel %vm419_vm3, %v522_v61, %v518_v57  ;;  %v592_v6 = vsel %vm405_vm1, %v591_v62, %v587_v60  ;;  %v300_v7 = vmul.f32 0.011627907, %v178_v4  ;;  %v314_v49 = vmul.f32 0.011627907, %v220_v3 }
  0xbf   :  { %v596_v8 = vrot.slane %v300_v7, %v1076_v14  ;;  %v666_v60 = vrot.slane %v314_v49, %v1067_v10 }
  0xc0   :  { %v136_v15 = vpop.xlane.xlu1 %135  ;;  %v223_v16 = vpop.xlane.xlu0 %222 }
  0xc1   :  { %v597_v17 = vsel %vm412_vm2, %v596_v8, %v592_v6  ;;  %v286_v45 = vmul.f32 0.011627907, %v136_v15  ;;  %v315_v46 = vmul.f32 0.011627907, %v223_v16 }
  0xc3   :  { %v527_v54 = vrot.slane %v286_v45, %v1082_v21  ;;  %v670_v55 = vrot.slane %v315_v46, %v1073_v13 }
  0xc4   :  { %v226_v18 = vpop.xlane.xlu1 %225  ;;  %v181_v19 = vpop.xlane.xlu0 %180 }
  0xc5   :  { %v316_v50 = vmul.f32 0.011627907, %v226_v18  ;;  %v301_v51 = vmul.f32 0.011627907, %v181_v19  ;;  %v528_v15 = vsel %vm426_vm4, %v527_v54, %v523_v5  ;;  %v671_v13 = vsel %vm405_vm1, %v670_v55, %v666_v60 }
  0xc6   :  { %vm744_vm1 = vcmask 1042434  }
  0xc7   :  { %v675_v61 = vrot.slane %v316_v50, %v1076_v14  ;;  %v601_v3 = vrot.slane %v301_v51, %v1070_v12 }
  0xc8   :  { %v184_v22 = vpop.xlane.xlu1 %183  ;;  %v139_v23 = vpop.xlane.xlu0 %138 }
  0xc9   :  { %v287_v56 = vmul.f32 0.011627907, %v139_v23  ;;  %v302_v57 = vmul.f32 0.011627907, %v184_v22  ;;  %v676_v23 = vsel %vm412_vm2, %v675_v61, %v671_v13  ;;  %v602_v5 = vsel %vm419_vm3, %v601_v3, %v597_v17 }
  0xca   :  { %vm746_vm2 = vcmask 1043459  }
  0xcb   :  { %v532_v16 = vrot.slane %v287_v56, %v1079_v20  ;;  %v606_v19 = vrot.slane %v302_v57, %v1082_v21 }
  0xcc   :  { %v142_v24 = vpop.xlane.xlu1 %141  ;;  %v229_v25 = vpop.xlane.xlu0 %228 }
  0xcd   :  { %v288_v58 = vmul.f32 0.011627907, %v142_v24  ;;  %v317_v59 = vmul.f32 0.011627907, %v229_v25  ;;  %v533_v49 = vsel %vm433_vm5, %v532_v16, %v528_v15  ;;  %v607_v51 = vsel %vm426_vm4, %v606_v19, %v602_v5 }
  0xcf   :  { %v537_v10 = vrot.slane %v288_v58, %v1093_v34  ;;  %v680_v14 = vrot.slane %v317_v59, %v1070_v12 }
  0xd0   :  { %v232_v26 = vpop.xlane.xlu1 %231  ;;  %v187_v27 = vpop.xlane.xlu0 %186 }
  0xd1   :  { %v318_v62 = vmul.f32 0.011627907, %v232_v26  ;;  %v303_v4 = vmul.f32 0.011627907, %v187_v27 }
  0xd3   :  { %v685_v24 = vrot.slane %v318_v62, %v1082_v21  ;;  %v611_v25 = vrot.slane %v303_v4, %v1079_v20  ;;  %v538_v21 = vsel %vm440_vm6, %v537_v10, %v533_v49 }
  0xd4   :  { %v190_v28 = vpop.xlane.xlu1 %189  ;;  %v145_v1 = vpop.xlane.xlu0 %144 }
  0xd5   :  { %v304_v6 = vmul.f32 0.011627907, %v190_v28  ;;  %v289_v18 = vmul.f32 0.011627907, %v145_v1 }
  0xd7   :  { %v616_v27 = vrot.slane %v304_v6, %v1093_v34  ;;  %v542_v12 = vrot.slane %v289_v18, %v1101_v40 }
  0xd8   :  { %v148_v31 = vpop.xlane.xlu1 %147  ;;  %v235_v32 = vpop.xlane.xlu0 %234 }
  0xd9   :  { %v290_v22 = vmul.f32 0.011627907, %v148_v31  ;;  %v319_v26 = vmul.f32 0.011627907, %v235_v32  ;;  %v681_v32 = vsel %vm419_vm3, %v680_v14, %v676_v23  ;;  %v543_v60 = vsel %vm447_vm7, %v542_v12, %v538_v21 }
  0xda   :  { %v686_v54 = vsel %vm426_vm4, %v685_v24, %v681_v32 }
  0xdb   :  { %v547_v17 = vrot.slane %v290_v22, %v1109_v48 }
  0xdc   :  { %v238_v33 = vpop.xlane.xlu1 %237  ;;  %v193_v35 = vpop.xlane.xlu0 %192 }
  0xdd   :  { %v320_v28 = vmul.f32 0.011627907, %v238_v33  ;;  %v305_v1 = vmul.f32 0.011627907, %v193_v35  ;;  %v612_v33 = vsel %vm433_vm5, %v611_v25, %v607_v51  ;;  %v690_v35 = vrot.slane %v319_v26, %v1079_v20 }
  0xde   :  { %v617_v56 = vsel %vm440_vm6, %v616_v27, %v612_v33  ;;  %v548_v3 = vsel %vm454_vm8, %v547_v17, %v543_v60 }
  0xe0   :  { %v196_v36 = vpop.xlane.xlu1 %195  ;;  %v151_v37 = vpop.xlane.xlu0 %150 }
  0xe1   :  { %v306_v31 = vmul.f32 0.011627907, %v196_v36  ;;  %v291_v50 = vmul.f32 0.011627907, %v151_v37  ;;  %v695_v36 = vrot.slane %v320_v28, %v1093_v34  ;;  %v621_v37 = vrot.slane %v305_v1, %v1101_v40 }
  0xe2   :  { %v691_v34 = vsel %vm433_vm5, %v690_v35, %v686_v54 }
  0xe3   :  { %v626_v61 = vrot.slane %v306_v31, %v1109_v48  ;;  %v552_v62 = vrot.slane %v291_v50, %v1106_v47  ;;  %v696_v16 = vsel %vm440_vm6, %v695_v36, %v691_v34  ;;  %v622_v18 = vsel %vm447_vm7, %v621_v37, %v617_v56 }
  0xe4   :  { %v154_v38 = vpop.xlane.xlu1 %153  ;;  %v1169_v39 = vpop.xlane.xlu0 %240 }
  0xe5   :  { %v292_v55 = vmul.f32 0.011627907, %v154_v38  ;;  %v321_v20 = vmul.f32 0.011627907, %v1169_v39 }
  0xe8   :  { %v1171_v41 = vpop.xlane.xlu1 %243  ;;  %v199_v42 = vpop.xlane.xlu0 %198 }
  0xe9   :  { %v307_v57 = vmul.f32 0.011627907, %v199_v42  ;;  %v557_v42 = vrot.slane %v292_v55, %v1125_v0  ;;  %v322_v15 = vmul.f32 0.011627907, %v1171_v41  ;;  %v700_v41 = vrot.slane %v321_v20, %v1101_v40 }
  0xeb   :  { %v705_v5 = vrot.slane %v322_v15, %v1109_v48 }
  0xec   :  { %v1173_v2 = vpop.xlane.xlu1 %201  ;;  %v157_v43 = vpop.xlane.xlu0 %156 }
  0xed   :  { %v293_v4 = vmul.f32 0.011627907, %v157_v43  ;;  %v308_v38 = vmul.f32 0.011627907, %v1173_v2  ;;  %v631_v43 = vrot.slane %v307_v57, %v1106_v47  ;;  %v627_v2 = vsel %vm454_vm8, %v626_v61, %v622_v18 }
  0xef   :  { %v562_v14 = vrot.slane %v293_v4, %v1122_v63  ;;  %v636_v23 = vrot.slane %v308_v38, %v1125_v0  ;;  %v632_v1 = vsel %vm461_vm9, %v631_v43, %v627_v2 }
  0xf0   :  { %v160_v52 = vpop.xlane.xlu1 %159  ;;  %v1175_v53 = vpop.xlane.xlu0 %246 }
  0xf1   :  { %v294_v6 = vmul.f32 0.011627907, %v160_v52  ;;  %v553_v52 = vsel %vm461_vm9, %v552_v62, %v548_v3  ;;  %v637_v51 = vsel %vm468_vm10, %v636_v23, %v632_v1  ;;  %v701_v62 = vsel %vm447_vm7, %v700_v41, %v696_v16 }
  0xf2   :  { %v558_v26 = vsel %vm468_vm10, %v557_v42, %v553_v52  ;;  %v706_v3 = vsel %vm454_vm8, %v705_v5, %v701_v62 }
  0xf3   :  { %v567_v24 = vrot.slane %v294_v6, %v1133_v11 }
  0xf4   :  { %v1182_v7 = vpop.xlane.xlu1 %249  ;;  %v205_v8 = vpop.xlane.xlu0 %204 }
  0xf5   :  { %v309_v22 = vmul.f32 0.011627907, %v205_v8  ;;  %v324_v8 = vmul.f32 0.011627907, %v1182_v7 }
  0xf7   :  { %v641_v31 = vrot.slane %v309_v22, %v1122_v63  ;;  %v715_v55 = vrot.slane %v324_v8, %v1125_v0 }
  0xf8   :  { %v208_v45 = vpop.xlane.xlu1 %207  ;;  %v163_v46 = vpop.xlane.xlu0 %162 }
  0xf9   :  { %v295_v13 = vmul.f32 0.011627907, %v163_v46  ;;  %v310_v25 = vmul.f32 0.011627907, %v208_v45  ;;  %v323_v46 = vmul.f32 0.011627907, %v1175_v53  ;;  %v563_v45 = vsel %vm475_vm11, %v562_v14, %v558_v26 }
  0xfa   :  { %v568_v21 = vsel %vm482_vm12, %v567_v24, %v563_v45 }
  0xfb   :  { %v572_v27 = vrot.slane %v295_v13, %v1130_v9  ;;  %v646_v32 = vrot.slane %v310_v25, %v1133_v11  ;;  %v710_v35 = vrot.slane %v323_v46, %v1106_v47 }
  0xfc   :  { %v166_v58 = vpop.xlane.xlu1 %165  ;;  %v253_v59 = vpop.xlane.xlu0 %252 }
  0xfd   :  { %v296_v19 = vmul.f32 0.011627907, %v166_v58  ;;  %v325_v17 = vmul.f32 0.011627907, %v253_v59  ;;  %v573_v53 = vsel %vm489_vm13, %v572_v27, %v568_v21  ;;  %v642_v58 = vsel %vm475_vm11, %v641_v31, %v637_v51 }
  0xfe   :  { %v647_v4 = vsel %vm482_vm12, %v646_v32, %v642_v58  ;;  %v711_v34 = vsel %vm461_vm9, %v710_v35, %v706_v3 }
  0xff   :  { %v577_v40 = vrot.slane %v296_v19, %v1147_v30  ;;  %v720_v47 = vrot.slane %v325_v17, %v1122_v63  ;;  %v716_v63 = vsel %vm468_vm10, %v715_v55, %v711_v34 }
 0x100   :  { %v256_v10 = vpop.xlane.xlu1 %255  ;;  %v211_v39 = vpop.xlane.xlu0 %210 }
 0x101   :  { %v311_v28 = vmul.f32 0.011627907, %v211_v39  ;;  %v326_v7 = vmul.f32 0.011627907, %v256_v10  ;;  %v578_v56 = vsel %vm496_vm14, %v577_v40, %v573_v53 }
 0x103   :  { %v651_v54 = vrot.slane %v311_v28, %v1130_v9  ;;  %v725_v20 = vrot.slane %v326_v7, %v1133_v11  ;;  %v721_v11 = vsel %vm475_vm11, %v720_v47, %v716_v63 }
 0x104   :  { %v214_v49 = vpop.xlane.xlu1 %213  ;;  %v169_v12 = vpop.xlane.xlu0 %168 }
 0x105   :  { %v312_v50 = vmul.f32 0.011627907, %v214_v49  ;;  %v297_v48 = vmul.f32 0.011627907, %v169_v12  ;;  %v652_v38 = vsel %vm489_vm13, %v651_v54, %v647_v4  ;;  %v726_v10 = vsel %vm482_vm12, %v725_v20, %v721_v11 }
 0x107   :  { %v582_v33 = vrot.slane %v297_v48, %v1144_v29  ;;  %v656_v36 = vrot.slane %v312_v50, %v1147_v30 }
 0x108   :  { %v217_v37 = vpop.xlane.xlu1 %216  ;;  %v259_v57 = vpop.xlane.xlu0 %258 }
 0x109   :  { %v583_v59 = vsel %vm503_vm15, %v582_v33, %v578_v56  ;;  %v313_v60 = vmul.f32 0.011627907, %v217_v37  ;;  %v327_v61 = vmul.f32 0.011627907, %v259_v57  ;;  %v657_v42 = vsel %vm496_vm14, %v656_v36, %v652_v38 }
 0x10a   :  { %v743_v0 = vsel %vm742_vm0, %v583_v59, %v1155_v44 }
 0x10b   :  { %v661_v6 = vrot.slane %v313_v60, %v1144_v29  ;;  %v730_v15 = vrot.slane %v327_v61, %v1130_v9 }
 0x10c   :  { %v262_v13 = vpop.xlane.xlu0 %261  ;;  %v265_v16 = vpop.xlane.xlu1 %264 }
 0x10d   :  { %v328_v18 = vmul.f32 0.011627907, %v262_v13  ;;  %v329_v44 = vmul.f32 0.011627907, %v265_v16  ;;  %v662_v43 = vsel %vm503_vm15, %v661_v6, %v657_v42  ;;  %v731_v9 = vsel %vm489_vm13, %v730_v15, %v726_v10 }
 0x10e   :  { %v745_v19 = vsel %vm744_vm1, %v662_v43, %v743_v0 }
 0x10f   :  { %v735_v39 = vrot.slane %v328_v18, %v1147_v30  ;;  %v740_v2 = vrot.slane %v329_v44, %v1144_v29 }
 0x111   :  { %v736_v52 = vsel %vm496_vm14, %v735_v39, %v731_v9 }
 0x112   :  { %v741_v14 = vsel %vm503_vm15, %v740_v2, %v736_v52 }
 0x113   :  { %v747_v22 = vsel %vm746_vm2, %v741_v14, %v745_v19 }
 0x114   :  { %749 = vst [vmem:[#allocation2] sm:$0xf] %v747_v22 }
 0x115   :  { %776 = shalt.err (!%p773_p4)
}
 0x116   :  { %s777_s22 = scalar_lea.hbm %s1281_s1, 64 }
 0x117   :  { %p778_p5 = scmp.ne.s32.totalorder %s1281_s1, %s777_s22  ;;  %p781_p6 = scmp.lt.u32.totalorder %s777_s22, %s1281_s1 }
 0x119   :  { %p783_p7 = pnand %p781_p6, %p778_p5 }
 0x11b   :  { %786 = shalt.err (!%p783_p7)
}
 0x11c   :  { %759 = dma.vmem_to_hbm [thread:$0]  %s757_s18, 64, %s1281_s1, [#allocation3]  }
 0x11d   :  { %787 = dma.done.wait [#allocation3], 64  }
 0x11e   :  { %788 = vsyncadd [#allocation3], 4294967232 }
 0x11f   :  { %763 = vsyncpa [#allocation3], 1 }

</bundles_post_ra>
